<compile_context>
chip_gen: v6e
topology: v6e:2x2x1
jax: 0.10.0
libtpu: 0.0.40
codegen_flags: <defaults>
</compile_context>

<pallas_src>
import functools

import jax
import jax.numpy as jnp
from jax.experimental import pallas as pl
from jax.experimental.pallas import tpu as pltpu


def _round_up(x: int, m: int) -> int:
    return (x + m - 1) // m * m


def _fused_mlp_kernel(x_ref, w_ref, b_ref, o_ref, *, slopes):
    """Runs the whole decoder on one (TB, Dpad) activation tile.

    x_ref: (TB, Dpad)      f32  activation tile (zero padded in unused lanes)
    w_ref: (L, Dpad, Dpad) f32 or bf16  stacked, zero-padded weights (VMEM-resident)
    b_ref: (L, 1, Dpad)    f32  stacked, zero-padded biases
    o_ref: (TB, Dpad)      f32  output tile
    """
    mxu_dtype = w_ref.dtype
    h = x_ref[...]                          # activations stay in vregs/VMEM
    for l, slope in enumerate(slopes):      # static unroll: L is tiny
        y = jnp.dot(h.astype(mxu_dtype), w_ref[l],
                    preferred_element_type=jnp.float32)   # MXU, f32 accumulation
        y = y + b_ref[l]                    # (1, Dpad) broadcast, f32
        h = jnp.maximum(y, slope * y)       # LeakyReLU, single VPU max
    o_ref[...] = h.astype(o_ref.dtype)


def fused_mlp(x, w_stack, b_stack, slopes, *, batch_tile=128):
    """x: (B, Din) f32 ; w_stack: (L, Dpad, Dpad) ; b_stack: (L, 1, Dpad) f32."""
    B, Din = x.shape
    L, Dpad, _ = w_stack.shape
    TB = min(int(batch_tile), _round_up(B, 8))   # >= 8 sublanes, <= batch_tile rows
    B_pad = _round_up(B, TB)
    x_pad = jnp.zeros((B_pad, Dpad), jnp.float32).at[:B, :Din].set(x)

    kernel = functools.partial(_fused_mlp_kernel,
                               slopes=tuple(float(s) for s in slopes))
    out = pl.pallas_call(
        kernel,
        out_shape=jax.ShapeDtypeStruct((B_pad, Dpad), jnp.float32),
        grid=(B_pad // TB,),
        in_specs=[
            pl.BlockSpec((TB, Dpad), lambda i: (i, 0)),          # activations: streamed
            pl.BlockSpec((L, Dpad, Dpad), lambda i: (0, 0, 0)),  # weights: VMEM-resident
            pl.BlockSpec((L, 1, Dpad), lambda i: (0, 0, 0)),     # biases:  VMEM-resident
        ],
        out_specs=pl.BlockSpec((TB, Dpad), lambda i: (i, 0)),
        compiler_params=pltpu.CompilerParams(
            dimension_semantics=("parallel",)),  # batch axis shards across TCs (v7x)
    )(x_pad, w_stack, b_stack)
    return out  # (B_pad, Dpad); caller slices the valid region


class AEDecPallas:
    """JAX/Pallas re-implementation of AE_Dec (fused MLP decoder)."""

    def __init__(self, layer_dims, key, *, batch_tile=128):
        self.layer_dims = list(layer_dims)
        self.batch_tile = int(batch_tile)
        n_layers = len(self.layer_dims) - 1
        self.layer_params = []  # unpadded (w (Din,Dout), b (Dout,), slope) per layer
        for i, (din, dout) in enumerate(zip(self.layer_dims[:-1], self.layer_dims[1:])):
            key, wk, bk = jax.random.split(key, 3)
            bound = 1.0 / (din ** 0.5)  # mirrors nn.Linear U(-1/sqrt(in), 1/sqrt(in))
            w = jax.random.uniform(wk, (din, dout), jnp.float32, -bound, bound)
            b = jax.random.uniform(bk, (dout,), jnp.float32, -bound, bound)
            # LeakyReLU() default slope 0.01 for intermediate layers,
            # LeakyReLU(0.1) after the final (reconstruction) layer.
            slope = 0.01 if (i + 1) < n_layers else 0.1
            self.layer_params.append((w, b, slope))

        # Zero-pad every layer to a common lane-dense (Dpad, Dpad) tile and stack.
        # (Wastes a little VMEM only if layer widths differ a lot — fine here.)
        Dpad = _round_up(max(self.layer_dims), 128)
        self.d_pad = Dpad
        w_stack = jnp.zeros((n_layers, Dpad, Dpad), jnp.float32)
        b_stack = jnp.zeros((n_layers, 1, Dpad), jnp.float32)
        for l, (w, b, _) in enumerate(self.layer_params):
            w_stack = w_stack.at[l, : w.shape[0], : w.shape[1]].set(w)
            b_stack = b_stack.at[l, 0, : b.shape[0]].set(b)
        self.w_stack = w_stack
        self.b_stack = b_stack
        self.slopes = tuple(s for (_, _, s) in self.layer_params)

    def __call__(self, code, *, mxu_dtype=jnp.float32):
        B = code.shape[0]
        # bf16 weights halve weight DMA bytes and double MXU rate; accum stays f32.
        w = self.w_stack.astype(mxu_dtype)
        out = fused_mlp(code, w, self.b_stack, self.slopes,
                        batch_tile=self.batch_tile)
        return out[:B, : self.layer_dims[-1]]


def _reference_forward(code, params, mxu_dtype=jnp.float32):
    """Pure-JAX reference (same math, no Pallas)."""
    x = code
    for w, b, slope in params:
        y = jnp.dot(x.astype(mxu_dtype), w.astype(mxu_dtype),
                    preferred_element_type=jnp.float32) + b
        x = jnp.maximum(y, slope * y)
    return x


if __name__ == "__main__":
    key = jax.random.PRNGKey(0)
    key, pkey, xkey = jax.random.split(key, 3)

    # Small decoder: latent dim 8 -> 32 -> 64 -> 64 (last = "input" size).
    layer_dims = [8, 32, 64, 64]
    batch = 4

    dec = AEDecPallas(layer_dims, pkey)
    code = jax.random.normal(xkey, (batch, layer_dims[0]), jnp.float32)

    # f32 MXU path: bit-compatible with the plain-JAX reference math.
    x_recon = jax.block_until_ready(dec(code, mxu_dtype=jnp.float32))
    x_ref = jax.block_until_ready(_reference_forward(code, dec.layer_params))
    assert x_recon.shape == (batch, layer_dims[-1])
    assert jnp.allclose(x_recon, x_ref, atol=1e-5, rtol=1e-5)

    # bf16 MXU path (perf config): compare against a reference doing the same casts.
    x_recon_bf16 = jax.block_until_ready(dec(code, mxu_dtype=jnp.bfloat16))
    x_ref_bf16 = jax.block_until_ready(
        _reference_forward(code, dec.layer_params, mxu_dtype=jnp.bfloat16))
    assert jnp.allclose(x_recon_bf16, x_ref_bf16, atol=1e-2, rtol=1e-2)

    print("KERNEL_OK")
</pallas_src>

<mosaic_0001>
module attributes {stable_mosaic.version = 11 : i64} {
  func.func @_fused_mlp_kernel(%arg0: i32, %arg1: memref<8x128xf32, #tpu.memory_space<vmem>>, %arg2: memref<3x128x128xf32, #tpu.memory_space<vmem>>, %arg3: memref<3x1x128xf32, #tpu.memory_space<vmem>>, %arg4: memref<8x128xf32, #tpu.memory_space<vmem>>) attributes {dimension_semantics = [#tpu.dimension_semantics<parallel>], iteration_bounds = array<i64: 1>, scalar_prefetch = 0 : i64, scratch_operands = 0 : i64, tpu.core_type = #tpu.core_type<tc>, window_params = [{transform_indices = @transform_0, window_bounds = array<i64: 8, 128>}, {pipeline_mode = #tpu.pipeline_mode<synchronous>, transform_indices = @transform_1, window_bounds = array<i64: 3, 128, 128>}, {pipeline_mode = #tpu.pipeline_mode<synchronous>, transform_indices = @transform_2, window_bounds = array<i64: 3, 1, 128>}, {transform_indices = @transform_3, window_bounds = array<i64: 8, 128>}]} {
    %c0 = arith.constant 0 : index
    %c0_0 = arith.constant 0 : index
    %0 = vector.load %arg1[%c0, %c0_0] : memref<8x128xf32, #tpu.memory_space<vmem>>, vector<8x128xf32>
    %c0_1 = arith.constant 0 : index
    %c0_2 = arith.constant 0 : index
    %c0_3 = arith.constant 0 : index
    %1 = vector.load %arg2[%c0_1, %c0_2, %c0_3] : memref<3x128x128xf32, #tpu.memory_space<vmem>>, vector<1x128x128xf32>
    %2 = vector.shape_cast %1 : vector<1x128x128xf32> to vector<128x128xf32>
    %cst = arith.constant dense<0.000000e+00> : vector<8x128xf32>
    %3 = tpu.matmul %0, %2, %cst {dimension_numbers = #tpu.dot_dimension_numbers<[1], [0], [0], [1], [0, 0, 1, 1], [], []>} : vector<8x128xf32>, vector<128x128xf32>, vector<8x128xf32> -> vector<8x128xf32>
    %c0_4 = arith.constant 0 : index
    %c0_5 = arith.constant 0 : index
    %c0_6 = arith.constant 0 : index
    %4 = vector.load %arg3[%c0_4, %c0_5, %c0_6] : memref<3x1x128xf32, #tpu.memory_space<vmem>>, vector<1x1x128xf32>
    %5 = vector.shape_cast %4 : vector<1x1x128xf32> to vector<1x128xf32>
    %6 = vector.broadcast %5 : vector<1x128xf32> to vector<8x128xf32>
    %7 = arith.addf %3, %6 : vector<8x128xf32>
    %cst_7 = arith.constant 0.00999999977 : f32
    %8 = vector.broadcast %cst_7 : f32 to vector<8x128xf32>
    %9 = arith.mulf %8, %7 : vector<8x128xf32>
    %10 = arith.maximumf %7, %9 : vector<8x128xf32>
    %c1 = arith.constant 1 : index
    %c0_8 = arith.constant 0 : index
    %c0_9 = arith.constant 0 : index
    %11 = vector.load %arg2[%c1, %c0_8, %c0_9] : memref<3x128x128xf32, #tpu.memory_space<vmem>>, vector<1x128x128xf32>
    %12 = vector.shape_cast %11 : vector<1x128x128xf32> to vector<128x128xf32>
    %cst_10 = arith.constant dense<0.000000e+00> : vector<8x128xf32>
    %13 = tpu.matmul %10, %12, %cst_10 {dimension_numbers = #tpu.dot_dimension_numbers<[1], [0], [0], [1], [0, 0, 1, 1], [], []>} : vector<8x128xf32>, vector<128x128xf32>, vector<8x128xf32> -> vector<8x128xf32>
    %c1_11 = arith.constant 1 : index
    %c0_12 = arith.constant 0 : index
    %c0_13 = arith.constant 0 : index
    %14 = vector.load %arg3[%c1_11, %c0_12, %c0_13] : memref<3x1x128xf32, #tpu.memory_space<vmem>>, vector<1x1x128xf32>
    %15 = vector.shape_cast %14 : vector<1x1x128xf32> to vector<1x128xf32>
    %16 = vector.broadcast %15 : vector<1x128xf32> to vector<8x128xf32>
    %17 = arith.addf %13, %16 : vector<8x128xf32>
    %cst_14 = arith.constant 0.00999999977 : f32
    %18 = vector.broadcast %cst_14 : f32 to vector<8x128xf32>
    %19 = arith.mulf %18, %17 : vector<8x128xf32>
    %20 = arith.maximumf %17, %19 : vector<8x128xf32>
    %c2 = arith.constant 2 : index
    %c0_15 = arith.constant 0 : index
    %c0_16 = arith.constant 0 : index
    %21 = vector.load %arg2[%c2, %c0_15, %c0_16] : memref<3x128x128xf32, #tpu.memory_space<vmem>>, vector<1x128x128xf32>
    %22 = vector.shape_cast %21 : vector<1x128x128xf32> to vector<128x128xf32>
    %cst_17 = arith.constant dense<0.000000e+00> : vector<8x128xf32>
    %23 = tpu.matmul %20, %22, %cst_17 {dimension_numbers = #tpu.dot_dimension_numbers<[1], [0], [0], [1], [0, 0, 1, 1], [], []>} : vector<8x128xf32>, vector<128x128xf32>, vector<8x128xf32> -> vector<8x128xf32>
    %c2_18 = arith.constant 2 : index
    %c0_19 = arith.constant 0 : index
    %c0_20 = arith.constant 0 : index
    %24 = vector.load %arg3[%c2_18, %c0_19, %c0_20] : memref<3x1x128xf32, #tpu.memory_space<vmem>>, vector<1x1x128xf32>
    %25 = vector.shape_cast %24 : vector<1x1x128xf32> to vector<1x128xf32>
    %26 = vector.broadcast %25 : vector<1x128xf32> to vector<8x128xf32>
    %27 = arith.addf %23, %26 : vector<8x128xf32>
    %cst_21 = arith.constant 1.000000e-01 : f32
    %28 = vector.broadcast %cst_21 : f32 to vector<8x128xf32>
    %29 = arith.mulf %28, %27 : vector<8x128xf32>
    %30 = arith.maximumf %27, %29 : vector<8x128xf32>
    %c0_22 = arith.constant 0 : index
    %c0_23 = arith.constant 0 : index
    %31 = vector.load %arg4[%c0_22, %c0_23] : memref<8x128xf32, #tpu.memory_space<vmem>>, vector<8x128xf32>
    tpu.vector_store %arg4[%c0_22, %c0_23], %30 {strides = array<i32>} : memref<8x128xf32, #tpu.memory_space<vmem>>, vector<8x128xf32>,
    return
  }
  func.func @transform_0(%arg0: i32) -> (i32, i32) {
    %c0_i32 = arith.constant 0 : i32
    %c0_i32_0 = arith.constant 0 : i32
    return %arg0, %c0_i32 : i32, i32
  }
  func.func @transform_1(%arg0: i32) -> (i32, i32, i32) {
    %c0_i32 = arith.constant 0 : i32
    %c0_i32_0 = arith.constant 0 : i32
    %c0_i32_1 = arith.constant 0 : i32
    %c0_i32_2 = arith.constant 0 : i32
    return %c0_i32, %c0_i32_0, %c0_i32_1 : i32, i32, i32
  }
  func.func @transform_2(%arg0: i32) -> (i32, i32, i32) {
    %c0_i32 = arith.constant 0 : i32
    %c0_i32_0 = arith.constant 0 : i32
    %c0_i32_1 = arith.constant 0 : i32
    %c0_i32_2 = arith.constant 0 : i32
    return %c0_i32, %c0_i32_0, %c0_i32_1 : i32, i32, i32
  }
  func.func @transform_3(%arg0: i32) -> (i32, i32) {
    %c0_i32 = arith.constant 0 : i32
    %c0_i32_0 = arith.constant 0 : i32
    return %arg0, %c0_i32 : i32, i32
  }
}

</mosaic_0001>

<bundles_post_ra>
// kernel: tpu_custom_call.1
= control target key start
LH: loop header
LB: loop body
LE: loop exit
PB: predicated region body
PF: predicated region fallthrough
CT: control target
= control target key end

     0   :  { %8 = vsyncpa [#allocation3], 0  ;;  %s681_s0 = inlined_call_operand.hbm [shape: f32[8,128], index: 0, kind: input, shape index: {}]   ;;  %s682_s1 = inlined_call_operand.hbm [shape: f32[3,128,128], index: 1, kind: input, shape index: {}]   ;;  %s683_s2 = inlined_call_operand.vmem [shape: f32[3,1,128], index: 2, kind: input, shape index: {}]   ;;  %s684_s3 = inlined_call_operand.hbm [shape: f32[8,128], index: 3, kind: output, shape index: {}]  }
   0x1   :  { %9 = vsyncpa [#allocation6], 0 }
   0x2   :  { %10 = vsyncpa [#allocation4], 0  ;;  %s582_s12 = smov [#allocation2]   ;;  %s583_s14 = smov [#allocation5]  }
   0x3   :  { %s17_s13 = sshll.u32 %s582_s12, 4  ;;  %s26_s15 = sshll.u32 %s583_s14, 4  ;;  %s18_s13 = int_to_ptr.vmem [resolvable:$true] %s17_s13  ;;  %s27_s15 = int_to_ptr.vmem [resolvable:$true] %s26_s15 }
   0x4   :  { %s524_s16 = scalar_lea.vmem %s18_s13, 128  ;;  %p529_p1 = scmp.lt.s32.totalorder %s18_s13, %s18_s13 }
   0x5   :  { %p525_p0 = scmp.ne.s32.totalorder %s18_s13, %s524_s16  ;;  %p530_p2 = scmp.lt.s32.totalorder %s524_s16, %s524_s16 }
   0x7   :  { %p531_p3 = por %p530_p2, %p529_p1 }
   0x9   :  { %p532_p4 = pnand %p531_p3, %p525_p0 }
   0xb   :  { %535 = shalt.err (!%p532_p4)
}
   0xc   :  { %20 = dma.hbm_to_vmem [thread:$0]  %s681_s0, 128, %s18_s13, [#allocation3]  }
   0xd   :  { %s544_s19 = scalar_lea.vmem %s27_s15, 6144  ;;  %p549_p6 = scmp.lt.s32.totalorder %s27_s15, %s27_s15 }
   0xe   :  { %p545_p5 = scmp.ne.s32.totalorder %s27_s15, %s544_s19  ;;  %p550_p7 = scmp.lt.s32.totalorder %s544_s19, %s544_s19 }
  0x10   :  { %p551_p8 = por %p550_p7, %p549_p6 }
  0x12   :  { %p552_p9 = pnand %p551_p8, %p545_p5 }
  0x14   :  { %555 = shalt.err (!%p552_p9)
}
  0x15   :  { %s584_s20 = smov 128   ;;  %s585_s21 = smov 8  }
  0x16   :  { %32 = dma.hbm_to_vmem [thread:$0]  %s682_s1, 6144, %s27_s15, [#allocation6], %s584_s20, %s584_s20, %s585_s21  }
  0x17   :  { %576 = dma.done.wait [#allocation3], 128  }
  0x18   :  { %577 = vsyncadd [#allocation3], 4294967168 }
  0x19   :  { %578 = dma.done.wait [#allocation6], 6144  }
  0x1a   :  { %579 = vsyncadd [#allocation6], 4294961152  ;;  %v586_v0 = vmov 0.0   ;;  %vm587_vm0 = vmmov 0   ;;  %v57_v1 = vld [vmem:[#allocation5 + $0x78] sm:$0xff]  ;;  %v56_v2 = vld [vmem:[#allocation5 + $0x70] sm:$0xff] }
  0x1b   :  { %404 = vmatprep.subr.mxu0 %v586_v0  ;;  %436 = vmatprep.mubr.msk.f32.mxu0 %vm587_vm0, %v586_v0  ;;  %v55_v3 = vld [vmem:[#allocation5 + $0x68] sm:$0xff]  ;;  %v54_v4 = vld [vmem:[#allocation5 + $0x60] sm:$0xff]  ;;  %v153_v5 = vld [vmem:[#allocation5 + $0xf8] sm:$0xff]  ;;  %s588_s28 = smov [#allocation7]  }
  0x1c   :  { %439 = vmatprep.subr.mxu1 %v586_v0  ;;  %471 = vmatprep.mubr.msk.f32.mxu1 %vm587_vm0, %v586_v0  ;;  %v53_v6 = vld [vmem:[#allocation5 + $0x58] sm:$0xff]  ;;  %v152_v7 = vld [vmem:[#allocation5 + $0xf0] sm:$0xff]  ;;  %v151_v8 = vld [vmem:[#allocation5 + $0xe8] sm:$0xff]  ;;  %s338_s29 = sshll.u32 %s588_s28, 4  ;;  %s339_s29 = int_to_ptr.vmem [resolvable:$true] %s338_s29 }
  0x1d   :  { %405 = vmatpush3.msra.mxu0 %v57_v1  ;;  %440 = vmatpush3.msra.mxu1 %v153_v5  ;;  %v52_v9 = vld [vmem:[#allocation5 + $0x50] sm:$0xff]  ;;  %v150_v10 = vld [vmem:[#allocation5 + $0xe0] sm:$0xff]  ;;  %v51_v11 = vld [vmem:[#allocation5 + $0x48] sm:$0xff]  ;;  %s556_s30 = scalar_lea.vmem %s339_s29, 128  ;;  %p561_p11 = scmp.lt.s32.totalorder %s339_s29, %s339_s29 }
  0x1e   :  { %406 = vmatprep.subr.mxu0 %v586_v0  ;;  %441 = vmatprep.subr.mxu1 %v586_v0  ;;  %v149_v12 = vld [vmem:[#allocation5 + $0xd8] sm:$0xff]  ;;  %v50_v13 = vld [vmem:[#allocation5 + $0x40] sm:$0xff]  ;;  %v148_v14 = vld [vmem:[#allocation5 + $0xd0] sm:$0xff]  ;;  %p557_p10 = scmp.ne.s32.totalorder %s339_s29, %s556_s30  ;;  %p562_p12 = scmp.lt.s32.totalorder %s556_s30, %s556_s30 }
  0x1f   :  { %407 = vmatpush3.msra.mxu0 %v56_v2  ;;  %442 = vmatpush3.msra.mxu1 %v152_v7  ;;  %v49_v15 = vld [vmem:[#allocation5 + $0x38] sm:$0xff]  ;;  %v147_v16 = vld [vmem:[#allocation5 + $0xc8] sm:$0xff]  ;;  %v48_v17 = vld [vmem:[#allocation5 + $0x30] sm:$0xff] }
  0x20   :  { %408 = vmatprep.subr.mxu0 %v586_v0  ;;  %443 = vmatprep.subr.mxu1 %v586_v0  ;;  %v146_v18 = vld [vmem:[#allocation5 + $0xc0] sm:$0xff]  ;;  %v47_v19 = vld [vmem:[#allocation5 + $0x28] sm:$0xff]  ;;  %v145_v20 = vld [vmem:[#allocation5 + $0xb8] sm:$0xff]  ;;  %p563_p13 = por %p562_p12, %p561_p11 }
  0x21   :  { %409 = vmatpush3.msra.mxu0 %v55_v3  ;;  %444 = vmatpush3.msra.mxu1 %v151_v8  ;;  %v46_v21 = vld [vmem:[#allocation5 + $0x20] sm:$0xff]  ;;  %v144_v22 = vld [vmem:[#allocation5 + $0xb0] sm:$0xff]  ;;  %v45_v23 = vld [vmem:[#allocation5 + $0x18] sm:$0xff] }
  0x22   :  { %410 = vmatprep.subr.mxu0 %v586_v0  ;;  %445 = vmatprep.subr.mxu1 %v586_v0  ;;  %v143_v24 = vld [vmem:[#allocation5 + $0xa8] sm:$0xff]  ;;  %v44_v25 = vld [vmem:[#allocation5 + $0x10] sm:$0xff]  ;;  %v142_v26 = vld [vmem:[#allocation5 + $0xa0] sm:$0xff]  ;;  %p564_p0 = pnand %p563_p13, %p557_p10 }
  0x23   :  { %411 = vmatpush3.msra.mxu0 %v54_v4  ;;  %446 = vmatpush3.msra.mxu1 %v150_v10  ;;  %v43_v27 = vld [vmem:[#allocation5 + $0x8] sm:$0xff]  ;;  %v42_v28 = vld [vmem:[#allocation5] sm:$0xff]  ;;  %v41_v29 = vld [vmem:[#allocation2] sm:$0xff] }
  0x24   :  { %412 = vmatprep.subr.mxu0 %v586_v0  ;;  %447 = vmatprep.subr.mxu1 %v586_v0  ;;  %v141_v30 = vld [vmem:[#allocation5 + $0x98] sm:$0xff]  ;;  %v140_v31 = vld [vmem:[#allocation5 + $0x90] sm:$0xff]  ;;  %v139_v32 = vld [vmem:[#allocation5 + $0x88] sm:$0xff] }
  0x25   :  { %413 = vmatpush3.msra.mxu0 %v53_v6  ;;  %448 = vmatpush3.msra.mxu1 %v149_v12  ;;  %v138_v33 = vld [vmem:[#allocation5 + $0x80] sm:$0xff]  ;;  %v250_v34 = vld [vmem:[#allocation5 + $0x178] sm:$0xff]  ;;  %v249_v35 = vld [vmem:[#allocation5 + $0x170] sm:$0xff] }
  0x26   :  { %414 = vmatprep.subr.mxu0 %v586_v0  ;;  %449 = vmatprep.subr.mxu1 %v586_v0  ;;  %v248_v36 = vld [vmem:[#allocation5 + $0x168] sm:$0xff]  ;;  %v247_v37 = vld [vmem:[#allocation5 + $0x160] sm:$0xff]  ;;  %v246_v38 = vld [vmem:[#allocation5 + $0x158] sm:$0xff] }
  0x27   :  { %415 = vmatpush3.msra.mxu0 %v52_v9  ;;  %450 = vmatpush3.msra.mxu1 %v148_v14  ;;  %v245_v39 = vld [vmem:[#allocation5 + $0x150] sm:$0xff]  ;;  %v244_v40 = vld [vmem:[#allocation5 + $0x148] sm:$0xff]  ;;  %v243_v41 = vld [vmem:[#allocation5 + $0x140] sm:$0xff] }
  0x28   :  { %416 = vmatprep.subr.mxu0 %v586_v0  ;;  %451 = vmatprep.subr.mxu1 %v586_v0  ;;  %v242_v42 = vld [vmem:[#allocation5 + $0x138] sm:$0xff]  ;;  %v241_v43 = vld [vmem:[#allocation5 + $0x130] sm:$0xff]  ;;  %v240_v44 = vld [vmem:[#allocation5 + $0x128] sm:$0xff] }
  0x29   :  { %417 = vmatpush3.msra.mxu0 %v51_v11  ;;  %452 = vmatpush3.msra.mxu1 %v147_v16  ;;  %v239_v45 = vld [vmem:[#allocation5 + $0x120] sm:$0xff]  ;;  %v348_v46 = vld [vmem:[%s683_s2] ss:$0 sm:$0xff]  ;;  %v237_v53 = vld [vmem:[#allocation5 + $0x110] sm:$0xff] }
  0x2a   :  { %418 = vmatprep.subr.mxu0 %v586_v0  ;;  %453 = vmatprep.subr.mxu1 %v586_v0  ;;  %v238_v52 = vld [vmem:[#allocation5 + $0x118] sm:$0xff]  ;;  %v236_v54 = vld [vmem:[#allocation5 + $0x108] sm:$0xff]  ;;  %v235_v55 = vld [vmem:[#allocation5 + $0x100] sm:$0xff] }
  0x2b   :  { %419 = vmatpush3.msra.mxu0 %v50_v13  ;;  %454 = vmatpush3.msra.mxu1 %v146_v18  ;;  %v350_v56 = vld [vmem:[%s683_s2 + $0x1] ss:$0 sm:$0xff]  ;;  %v352_v62 = vld [vmem:[%s683_s2 + $0x2] ss:$0 sm:$0xff] }
  0x2c   :  { %420 = vmatprep.subr.mxu0 %v586_v0  ;;  %455 = vmatprep.subr.mxu1 %v586_v0 }
  0x2d   :  { %421 = vmatpush3.msra.mxu0 %v49_v15  ;;  %456 = vmatpush3.msra.mxu1 %v145_v20 }
  0x2e   :  { %422 = vmatprep.subr.mxu0 %v586_v0  ;;  %457 = vmatprep.subr.mxu1 %v586_v0 }
  0x2f   :  { %423 = vmatpush3.msra.mxu0 %v48_v17  ;;  %458 = vmatpush3.msra.mxu1 %v144_v22 }
  0x30   :  { %424 = vmatprep.subr.mxu0 %v586_v0  ;;  %459 = vmatprep.subr.mxu1 %v586_v0 }
  0x31   :  { %425 = vmatpush3.msra.mxu0 %v47_v19  ;;  %460 = vmatpush3.msra.mxu1 %v143_v24 }
  0x32   :  { %426 = vmatprep.subr.mxu0 %v586_v0  ;;  %461 = vmatprep.subr.mxu1 %v586_v0 }
  0x33   :  { %427 = vmatpush3.msra.mxu0 %v46_v21  ;;  %462 = vmatpush3.msra.mxu1 %v142_v26 }
  0x34   :  { %428 = vmatprep.subr.mxu0 %v586_v0  ;;  %463 = vmatprep.subr.mxu1 %v586_v0 }
  0x35   :  { %429 = vmatpush3.msra.mxu0 %v45_v23  ;;  %464 = vmatpush3.msra.mxu1 %v141_v30 }
  0x36   :  { %430 = vmatprep.subr.mxu0 %v586_v0  ;;  %465 = vmatprep.subr.mxu1 %v586_v0 }
  0x37   :  { %431 = vmatpush3.msra.mxu0 %v44_v25  ;;  %466 = vmatpush3.msra.mxu1 %v140_v31 }
  0x38   :  { %432 = vmatprep.subr.mxu0 %v586_v0  ;;  %467 = vmatprep.subr.mxu1 %v586_v0 }
  0x39   :  { %433 = vmatpush3.msra.mxu0 %v43_v27  ;;  %468 = vmatpush3.msra.mxu1 %v139_v32 }
  0x3a   :  { %434 = vmatprep.subr.mxu0 %v586_v0  ;;  %469 = vmatprep.subr.mxu1 %v586_v0 }
  0x3b   :  { %435 = vmatpush3.msra.mxu0 %v42_v28  ;;  %470 = vmatpush3.msra.mxu1 %v138_v33 }
  0x3c   :  { %437 = vmatmul.mubr.f32.vlgmr.msra.gmra.mxu0 %v41_v29  ;;  %474 = vmatprep.subr.mxu0 %v586_v0 }
  0x3d   :  { %506 = vmatprep.mubr.msk.f32.mxu0 %vm587_vm0, %v586_v0  ;;  %475 = vmatpush3.msra.mxu0 %v250_v34 }
  0x3e   :  { %476 = vmatprep.subr.mxu0 %v586_v0 }
  0x3f   :  { %477 = vmatpush3.msra.mxu0 %v249_v35 }
  0x40   :  { %478 = vmatprep.subr.mxu0 %v586_v0 }
  0x41   :  { %479 = vmatpush3.msra.mxu0 %v248_v36 }
  0x42   :  { %480 = vmatprep.subr.mxu0 %v586_v0 }
  0x43   :  { %481 = vmatpush3.msra.mxu0 %v247_v37 }
  0x44   :  { %482 = vmatprep.subr.mxu0 %v586_v0 }
  0x45   :  { %483 = vmatpush3.msra.mxu0 %v246_v38 }
  0x46   :  { %484 = vmatprep.subr.mxu0 %v586_v0 }
  0x47   :  { %485 = vmatpush3.msra.mxu0 %v245_v39 }
  0x48   :  { %486 = vmatprep.subr.mxu0 %v586_v0 }
  0x49   :  { %487 = vmatpush3.msra.mxu0 %v244_v40 }
  0x4a   :  { %488 = vmatprep.subr.mxu0 %v586_v0 }
  0x4b   :  { %489 = vmatpush3.msra.mxu0 %v243_v41 }
  0x4c   :  { %490 = vmatprep.subr.mxu0 %v586_v0 }
  0x4d   :  { %491 = vmatpush3.msra.mxu0 %v242_v42 }
  0x4e   :  { %492 = vmatprep.subr.mxu0 %v586_v0 }
  0x4f   :  { %493 = vmatpush3.msra.mxu0 %v241_v43 }
  0x50   :  { %494 = vmatprep.subr.mxu0 %v586_v0 }
  0x51   :  { %495 = vmatpush3.msra.mxu0 %v240_v44 }
  0x52   :  { %496 = vmatprep.subr.mxu0 %v586_v0 }
  0x53   :  { %497 = vmatpush3.msra.mxu0 %v239_v45 }
  0x54   :  { %498 = vmatprep.subr.mxu0 %v586_v0 }
  0x55   :  { %499 = vmatpush3.msra.mxu0 %v238_v52 }
  0x56   :  { %500 = vmatprep.subr.mxu0 %v586_v0 }
  0x57   :  { %501 = vmatpush3.msra.mxu0 %v237_v53 }
  0x58   :  { %502 = vmatprep.subr.mxu0 %v586_v0 }
  0x59   :  { %503 = vmatpush3.msra.mxu0 %v236_v54 }
  0x5a   :  { %504 = vmatprep.subr.mxu0 %v586_v0 }
  0x5b   :  { %505 = vmatpush3.msra.mxu0 %v235_v55 }
  0xfc   :  { %v131_v47 = vpop.f32.mrf.mxu0 }
  0xfd   :  { %v132_v48 = vadd.f32 %v348_v46, %v131_v47 }
  0xfe   :  { %v438_v49 = vpop.f32.mrf.mxu0 }
  0xff   :  { %v135_v50 = vmul.f32 0.01, %v132_v48 }
 0x101   :  { %v136_v51 = vmax.f32 %v132_v48, %v135_v50 }
 0x103   :  { %472 = vmatmul.mubr.f32.vlgmr.msra.gmra.mxu1 %v136_v51 }
 0x1c3   :  { %v228_v57 = vpop.f32.mrf.mxu1 }
 0x1c4   :  { %v229_v58 = vadd.f32 %v350_v56, %v228_v57 }
 0x1c5   :  { %v473_v59 = vpop.f32.mrf.mxu1 }
 0x1c6   :  { %v232_v60 = vmul.f32 0.01, %v229_v58 }
 0x1c8   :  { %v233_v61 = vmax.f32 %v229_v58, %v232_v60 }
 0x1ca   :  { %507 = vmatmul.mubr.f32.vlgmr.msra.gmra.mxu0 %v233_v61 }
 0x28a   :  { %v325_v63 = vpop.f32.mrf.mxu0 }
 0x28b   :  { %v326_v1 = vadd.f32 %v352_v62, %v325_v63 }
 0x28c   :  { %v508_v2 = vpop.f32.mrf.mxu0 }
 0x28d   :  { %v329_v0 = vmul.f32 0.1, %v326_v1 }
 0x28f   :  { %v330_v3 = vmax.f32 %v326_v1, %v329_v0 }
 0x291   :  { %331 = vst [vmem:[#allocation7] sm:$0xff] %v330_v3 }
 0x292   :  { %567 = shalt.err (!%p564_p0)
}
 0x293   :  { %341 = dma.vmem_to_hbm [thread:$0]  %s339_s29, 128, %s684_s3, [#allocation4]  }
 0x294   :  { %580 = dma.done.wait [#allocation4], 128  }
 0x295   :  { %581 = vsyncadd [#allocation4], 4294967168 }
 0x296   :  { %345 = vsyncpa [#allocation3], 1 }
 0x297   :  { %346 = vsyncpa [#allocation6], 1 }
 0x298   :  { %347 = vsyncpa [#allocation4], 1 }

</bundles_post_ra>
